<compile_context>
chip_gen: v7x
topology: tpu7x:2x2x1
jax: 0.10.0
libtpu: 0.0.40
codegen_flags: <defaults>
</compile_context>

<pallas_src>
import jax
import jax.numpy as jnp
from jax.experimental import pallas as pl
from jax.experimental.pallas import tpu as pltpu

_LANE = 128
_WIDE_LANES = 1024
_TINY_ELEMS = 8 * _LANE  # below this, fused plain-XLA is strictly cheaper


# ----------------------------- kernel body ---------------------------------

def _dispact_kernel(x_ref, o_ref):
    # PyTorch F.softplus (beta=1, threshold=20) followed by clamp(1e-4, 1e4).
    x = x_ref[...].astype(jnp.float32)
    safe_x = jnp.minimum(x, 20.0)                      # avoid exp overflow
    sp = jnp.where(x > 20.0, x, jnp.log1p(jnp.exp(safe_x)))
    o_ref[...] = jnp.clip(sp, 0.0001, 10000.0).astype(o_ref.dtype)


def _softplus_clamp_jnp(x):
    # Same math in plain jnp (reference + tiny-input fallback).
    xf = x.astype(jnp.float32)
    sp = jnp.where(xf > 20.0, xf, jnp.log1p(jnp.exp(jnp.minimum(xf, 20.0))))
    return jnp.clip(sp, 0.0001, 10000.0).astype(x.dtype)


# --------------------------- sizing heuristics ------------------------------

def _tpu_generation():
    try:
        kind = jax.devices()[0].device_kind.lower()
    except Exception:
        return 0
    for g in (7, 6, 5, 4):
        if f"v{g}" in kind:
            return g
    return 0


def _round_up(v, m):
    return -(-v // m) * m


def _sublane_pack(itemsize):
    # Native sublane packing: 8 for 4-byte, 16 for 2-byte, 32 for 1-byte dtypes.
    return max(8, 32 // max(1, itemsize))


def _target_block_bytes(gen):
    if gen >= 7:
        return 8 * 1024 * 1024   # 3.2 TB/s HBM: big blocks amortize step cost
    if gen == 6:
        return 4 * 1024 * 1024   # 2 bufs x (in+out) x 4 MiB = 16 < 32 MiB default
    return 2 * 1024 * 1024       # v5e: stay well inside 16 MiB scoped default


def _pick_block_rows(rows, w, itemsize, pack, block_bytes, even_steps):
    """Block rows: ~block_bytes per step, multiple of `pack` (or full rows)."""
    row_bytes = w * itemsize
    target = max(pack, (block_bytes // max(1, row_bytes)) // pack * pack)
    block_rows = rows if target >= rows else target
    if even_steps and rows > pack:
        steps = -(-rows // block_rows)
        if steps % 2 == 1:
            # Split into an even number of near-equal blocks for 2 TensorCores.
            steps += 1
            cand = _round_up(-(-rows // steps), pack)
            block_rows = min(max(pack, cand), rows)
    return block_rows


# ------------------------------ pallas_call ---------------------------------

def _run_kernel(x2d, block_rows, gen):
    rows, w = x2d.shape
    n_elems = rows * w
    itemsize = jnp.dtype(x2d.dtype).itemsize
    grid = (pl.cdiv(rows, block_rows),)

    # CORE_PARALLEL only on v7x and only when both TCs get an equal step count.
    if gen >= 7 and grid[0] % 2 == 0:
        sem = pltpu.CORE_PARALLEL
    else:
        sem = pltpu.PARALLEL
    vmem_limit = (48 * 1024 * 1024) if gen >= 7 else None

    cost = pl.CostEstimate(
        flops=5 * n_elems,                      # min / cmp / select / clip
        transcendentals=2 * n_elems,            # exp + log1p per element
        bytes_accessed=2 * n_elems * itemsize,  # read + write
    )

    def call(extra_input_buffering):
        if extra_input_buffering:
            # DMA-limited streaming kernel: a third input buffer keeps two
            # input DMAs in flight across per-step bookkeeping gaps.
            in_spec = pl.BlockSpec((block_rows, w), lambda i: (i, 0),
                                   pipeline_mode=pl.Buffered(3))
        else:
            in_spec = pl.BlockSpec((block_rows, w), lambda i: (i, 0))
        return pl.pallas_call(
            _dispact_kernel,
            out_shape=jax.ShapeDtypeStruct((rows, w), x2d.dtype),
            grid_spec=pltpu.PrefetchScalarGridSpec(
                num_scalar_prefetch=0,
                grid=grid,
                in_specs=[in_spec],
                out_specs=pl.BlockSpec((block_rows, w), lambda i: (i, 0)),
            ),
            compiler_params=pltpu.CompilerParams(
                dimension_semantics=(sem,),
                vmem_limit_bytes=vmem_limit,
            ),
            cost_estimate=cost,
        )(x2d)

    try:
        return call(True)
    except Exception:
        # Fall back to the default double-buffered pipeline if Buffered(3)
        # is unavailable / rejected on this JAX / chip combination.
        return call(False)


# -------------------------------- wrapper -----------------------------------

def dispact(x, *, block_bytes=None):
    """Elementwise clamp(softplus(x), 1e-4, 1e4) via a Pallas TPU kernel."""
    orig_shape = x.shape
    n = x.size
    gen = _tpu_generation()
    if block_bytes is None:
        block_bytes = _target_block_bytes(gen)
    itemsize = jnp.dtype(x.dtype).itemsize
    pack = _sublane_pack(itemsize)

    # Tiny inputs: one fused XLA elementwise pass (1 read + 1 write) beats
    # custom-call dispatch + padding round trips.
    if n < _TINY_ELEMS:
        return _softplus_clamp_jnp(x)

    # Preferred path: lane-dense 2-D view [rows, W], W a multiple of 128.
    w = 0
    for cand in (_WIDE_LANES, 512, 256, _LANE):
        if n % cand == 0:
            w = cand
            break

    if w:
        rows = n // w
        x2d = x.reshape(rows, w)          # contiguous collapse: no HBM copy
    elif x.ndim >= 2 and orig_shape[-1] * itemsize <= block_bytes:
        # Ragged total size: keep the (full) trailing dim as the lane axis and
        # collapse leading dims.  Single pallas_call over the whole tensor —
        # no pad / slice / concat HBM round trips; stores may be lane-masked
        # if the trailing dim is small, but HBM traffic is exactly 1R + 1W.
        w = orig_shape[-1]
        rows = n // w
        x2d = x.reshape(rows, w)
    else:
        # TODO(synk): 1-D ragged (or pathologically wide trailing dim) inputs
        # fall back to fused XLA; a masked 1-D Pallas block would cover this.
        return _softplus_clamp_jnp(x)

    block_rows = _pick_block_rows(rows, w, itemsize, pack, block_bytes,
                                  even_steps=(gen >= 7))
    out2d = _run_kernel(x2d, block_rows, gen)
    return out2d.reshape(orig_shape)


# --------------------------------- tests ------------------------------------

if __name__ == "__main__":
    key = jax.random.PRNGKey(0)
    k1, k2, k3 = jax.random.split(key, 3)

    # Main case: NCHW input (batch=2, channels=4, 16x16) -> lane-dense path.
    x = jax.random.normal(key, (2, 4, 16, 16), dtype=jnp.float32) * 5.0
    out = jax.block_until_ready(dispact(x))
    ref = _softplus_clamp_jnp(x)
    assert out.shape == x.shape and out.dtype == x.dtype
    assert jnp.allclose(out, ref, rtol=1e-5, atol=1e-5), "mismatch (main path)"

    # Ragged total size (1155 elems): keep-last-dim path, exercises x > 20.
    y = jax.random.normal(k1, (3, 5, 7, 11), dtype=jnp.float32) * 25.0
    out_y = jax.block_until_ready(dispact(y))
    assert jnp.allclose(out_y, _softplus_clamp_jnp(y), rtol=1e-5, atol=1e-5), \
        "mismatch (ragged path)"

    # Multi-step grid with a partial final row-block (26 rows, block_rows=8).
    z = jax.random.normal(k2, (104, 256), dtype=jnp.float32) * 5.0
    out_z = jax.block_until_ready(dispact(z, block_bytes=8 * 1024 * 4))
    assert jnp.allclose(out_z, _softplus_clamp_jnp(z), rtol=1e-5, atol=1e-5), \
        "mismatch (partial-block path)"

    # Tiny input: fused-XLA bypass.
    t = jax.random.normal(k3, (4, 4), dtype=jnp.float32)
    out_t = jax.block_until_ready(dispact(t))
    assert jnp.allclose(out_t, _softplus_clamp_jnp(t), rtol=1e-5, atol=1e-5), \
        "mismatch (tiny path)"

    print("KERNEL_OK")
</pallas_src>

<mosaic_0001>
module attributes {stable_mosaic.version = 11 : i64} {
  func.func @_dispact_kernel(%arg0: i32, %arg1: memref<2x1024xf32, #tpu.memory_space<vmem>>, %arg2: memref<2x1024xf32, #tpu.memory_space<vmem>>) attributes {dimension_semantics = [#tpu.dimension_semantics<parallel>], iteration_bounds = array<i64: 1>, scalar_prefetch = 0 : i64, scratch_operands = 0 : i64, tpu.core_type = #tpu.core_type<tc>, window_params = [{transform_indices = @transform_0, window_bounds = array<i64: 2, 1024>}, {transform_indices = @transform_1, window_bounds = array<i64: 2, 1024>}]} {
    %c0 = arith.constant 0 : index
    %c0_0 = arith.constant 0 : index
    %0 = vector.load %arg1[%c0, %c0_0] : memref<2x1024xf32, #tpu.memory_space<vmem>>, vector<2x1024xf32>
    %cst = arith.constant 2.000000e+01 : f32
    %1 = vector.broadcast %cst : f32 to vector<2x1024xf32>
    %2 = arith.minimumf %0, %1 : vector<2x1024xf32>
    %cst_1 = arith.constant 2.000000e+01 : f32
    %3 = vector.broadcast %cst_1 : f32 to vector<2x1024xf32>
    %4 = arith.cmpf ogt, %0, %3 : vector<2x1024xf32>
    %5 = math.exp %2 : vector<2x1024xf32>
    %6 = math.log1p %5 : vector<2x1024xf32>
    %7 = arith.select %4, %0, %6 : vector<2x1024xi1>, vector<2x1024xf32>
    %cst_2 = arith.constant 9.99999974E-5 : f32
    %cst_3 = arith.constant 1.000000e+04 : f32
    %8 = vector.broadcast %cst_2 : f32 to vector<2x1024xf32>
    %9 = arith.maximumf %8, %7 : vector<2x1024xf32>
    %10 = vector.broadcast %cst_3 : f32 to vector<2x1024xf32>
    %11 = arith.minimumf %10, %9 : vector<2x1024xf32>
    %c0_4 = arith.constant 0 : index
    %c0_5 = arith.constant 0 : index
    %12 = vector.load %arg2[%c0_4, %c0_5] : memref<2x1024xf32, #tpu.memory_space<vmem>>, vector<2x1024xf32>
    tpu.vector_store %arg2[%c0_4, %c0_5], %11 {strides = array<i32>} : memref<2x1024xf32, #tpu.memory_space<vmem>>, vector<2x1024xf32>,
    return
  }
  func.func @transform_0(%arg0: i32) -> (i32, i32) {
    %c0_i32 = arith.constant 0 : i32
    %c0_i32_0 = arith.constant 0 : i32
    return %arg0, %c0_i32 : i32, i32
  }
  func.func @transform_1(%arg0: i32) -> (i32, i32) {
    %c0_i32 = arith.constant 0 : i32
    %c0_i32_0 = arith.constant 0 : i32
    return %arg0, %c0_i32 : i32, i32
  }
}

</mosaic_0001>

<bundles_post_ra>
// kernel: tpu_custom_call.1
= control target key start
LH: loop header
LB: loop body
LE: loop exit
PB: predicated region body
PF: predicated region fallthrough
CT: control target
= control target key end

     0   :  { %6 = vsyncpa [#allocation3], 0  ;;  %s166_s0 = inlined_call_operand.hbm [shape: f32[2,1024], index: 0, kind: input, shape index: {}]   ;;  %s167_s1 = inlined_call_operand.hbm [shape: f32[2,1024], index: 1, kind: output, shape index: {}]  }
   0x1   :  { %7 = vsyncpa [#allocation4], 0  ;;  %s130_s6 = smov [#allocation2]   ;;  %s82_s10 = scalar_lea.hbm %s166_s0, 256 }
   0x2   :  { %s14_s7 = sshll.u32 %s130_s6, 4  ;;  %p83_p0 = scmp.ne.s32.totalorder %s166_s0, %s82_s10  ;;  %s15_s7 = int_to_ptr.vmem [resolvable:$true] %s14_s7 }
   0x3   :  { %p86_p1 = scmp.lt.u32.totalorder %s82_s10, %s166_s0 }
   0x5   :  { %p88_p2 = pnand %p86_p1, %p83_p0 }
   0x7   :  { %91 = shalt.err (!%p88_p2)
}
   0x8   :  { %s92_s15 = scalar_lea.vmem %s15_s7, 256  ;;  %p97_p4 = scmp.lt.s32.totalorder %s15_s7, %s15_s7 }
   0x9   :  { %p93_p3 = scmp.ne.s32.totalorder %s15_s7, %s92_s15  ;;  %p98_p5 = scmp.lt.s32.totalorder %s92_s15, %s92_s15 }
   0xb   :  { %p99_p6 = por %p98_p5, %p97_p4 }
   0xd   :  { %p100_p7 = pnand %p99_p6, %p93_p3 }
   0xf   :  { %103 = shalt.err (!%p100_p7)
}
  0x10   :  { %17 = dma.hbm_to_vmem [thread:$0]  %s166_s0, 256, %s15_s7, [#allocation3]  }
  0x11   :  { %126 = dma.done.wait [#allocation3], 256  }
  0x12   :  { %127 = vsyncadd [#allocation3], 4294967040  ;;  %v21_v0 = vld [vmem:[#allocation2] sm:$0xff]  ;;  %v22_v1 = vld [vmem:[#allocation2 + $0x8] sm:$0xff]  ;;  %s131_s0 = smov [#allocation5]  }
  0x13   :  { %v23_v2 = vmin.f32 %v21_v0, 20.0  ;;  %v24_v3 = vmin.f32 %v22_v1, 20.0  ;;  %vm25_vm1 = vcmp.gt.f32.partialorder %v21_v0, 20.0  ;;  %vm26_vm3 = vcmp.gt.f32.partialorder %v22_v1, 20.0  ;;  %s63_s18 = sshll.u32 %s131_s0, 4  ;;  %s64_s18 = int_to_ptr.vmem [resolvable:$true] %s63_s18 }
  0x14   :  { %s104_s19 = scalar_lea.vmem %s64_s18, 256  ;;  %p109_p9 = scmp.lt.s32.totalorder %s64_s18, %s64_s18 }
  0x15   :  { %v27_v4 = vmul.f32 1.442695, %v23_v2  ;;  %v29_v5 = vmul.f32 1.442695, %v24_v3  ;;  %p105_p8 = scmp.ne.s32.totalorder %s64_s18, %s104_s19  ;;  %p110_p10 = scmp.lt.s32.totalorder %s104_s19, %s104_s19 }
  0x17   :  { %74 = vpow2.f32 %v27_v4  ;;  %p111_p11 = por %p110_p10, %p109_p9 }
  0x18   :  { %76 = vpow2.f32 %v29_v5 }
  0x19   :  { %p112_p12 = pnand %p111_p11, %p105_p8 }
  0x21   :  { %v75_v6 = vpop.eup %74 }
  0x22   :  { %v77_v7 = vpop.eup %76  ;;  %v31_v8 = vadd.f32 1.0, %v75_v6  ;;  %v34_v10 = vmul.f32 -0.5, %v75_v6  ;;  %v37_v13 = vand.u32 2147483647, %v75_v6 }
  0x23   :  { %v40_v9 = vadd.f32 1.0, %v77_v7  ;;  %v43_v11 = vmul.f32 -0.5, %v77_v7  ;;  %v46_v15 = vand.u32 2147483647, %v77_v7 }
  0x24   :  { %78 = vlog2.f32 %v31_v8  ;;  %v35_v12 = vadd.f32 1.0, %v34_v10  ;;  %vm38_vm0 = vcmp.lt.f32.partialorder %v37_v13, 0.0004427343 }
  0x25   :  { %80 = vlog2.f32 %v40_v9  ;;  %v44_v14 = vadd.f32 1.0, %v43_v11  ;;  %vm47_vm2 = vcmp.lt.f32.partialorder %v46_v15, 0.0004427343 }
  0x26   :  { %v36_v16 = vmul.f32 %v75_v6, %v35_v12 }
  0x27   :  { %v45_v18 = vmul.f32 %v77_v7, %v44_v14 }
  0x2e   :  { %v79_v17 = vpop.eup %78 }
  0x2f   :  { %v81_v19 = vpop.eup %80  ;;  %v33_v20 = vmul.f32 0.6931472, %v79_v17 }
  0x30   :  { %v42_v21 = vmul.f32 0.6931472, %v81_v19 }
  0x31   :  { %v39_v22 = vsel %vm38_vm0, %v36_v16, %v33_v20 }
  0x32   :  { %v49_v23 = vsel %vm25_vm1, %v21_v0, %v39_v22  ;;  %v48_v24 = vsel %vm47_vm2, %v45_v18, %v42_v21 }
  0x33   :  { %v51_v25 = vmax.f32 %v49_v23, 0.0001  ;;  %v50_v26 = vsel %vm26_vm3, %v22_v1, %v48_v24 }
  0x34   :  { %v52_v27 = vmax.f32 %v50_v26, 0.0001 }
  0x35   :  { %v53_v28 = vmin.f32 %v51_v25, 10000.0 }
  0x36   :  { %v54_v29 = vmin.f32 %v52_v27, 10000.0 }
  0x37   :  { %55 = vst [vmem:[#allocation5] sm:$0xff] %v53_v28 }
  0x38   :  { %56 = vst [vmem:[#allocation5 + $0x8] sm:$0xff] %v54_v29 }
  0x39   :  { %115 = shalt.err (!%p112_p12)
}
  0x3a   :  { %s116_s22 = scalar_lea.hbm %s167_s1, 256 }
  0x3b   :  { %p117_p13 = scmp.ne.s32.totalorder %s167_s1, %s116_s22  ;;  %p120_p0 = scmp.lt.u32.totalorder %s116_s22, %s167_s1 }
  0x3d   :  { %p122_p1 = pnand %p120_p0, %p117_p13 }
  0x3f   :  { %125 = shalt.err (!%p122_p1)
}
  0x40   :  { %66 = dma.vmem_to_hbm [thread:$0]  %s64_s18, 256, %s167_s1, [#allocation4]  }
  0x41   :  { %128 = dma.done.wait [#allocation4], 256  }
  0x42   :  { %129 = vsyncadd [#allocation4], 4294967040 }
  0x43   :  { %70 = vsyncpa [#allocation3], 1 }
  0x44   :  { %71 = vsyncpa [#allocation4], 1 }

</bundles_post_ra>
